<compile_context>
chip_gen: v7x
topology: tpu7x:2x2x1
jax: 0.10.0
libtpu: 0.0.40
codegen_flags: <defaults>
</compile_context>

<pallas_src>
import functools

import jax
import jax.numpy as jnp
from jax import lax
from jax.experimental import pallas as pl
from jax.experimental.pallas import tpu as pltpu

_LANE = 128


def _round_up(x, m):
    return (x + m - 1) // m * m


def _pick_tile_h(H_out, W_out, Wp, Cin_p, Cout_p, K, halo, vmem_budget_bytes):
    """Largest divisor of H_out (>= halo) whose per-step working set fits the budget."""
    for th in range(H_out, 0, -1):
        if H_out % th or th < halo:
            continue
        x_blk = th * Wp * Cin_p * 2                 # bf16 input block (fetched as main and as halo)
        o_blk = th * W_out * Cout_p * 4             # f32 output block
        im2col = th * W_out * K * K * Cin_p * 2     # bf16 im2col patch (live in VMEM/vregs)
        w_b = K * K * Cin_p * Cout_p * 2            # resident weights
        acc = th * W_out * Cout_p * 4               # f32 matmul result
        need = 2 * (2 * x_blk) + 2 * o_blk + im2col + 2 * w_b + acc  # double-buffered ins/outs
        if need <= vmem_budget_bytes:
            return th
    raise ValueError(f"no feasible H tile (H_out={H_out}, halo={halo})")


def _convt_bn_relu_kernel(xm_ref, xh_ref, w_ref, scale_ref, shift_ref, o_ref, *,
                          tile_h, W_out, Cin_p, K, d, halo):
    """One (batch, row-tile) per grid step.

    xm_ref   : (1, tile_h, Wp, Cin_p)   bf16  padded-input rows [h*tile_h, (h+1)*tile_h)
    xh_ref   : (1, tile_h, Wp, Cin_p)   bf16  next row block; only its first `halo` rows are used
    w_ref    : (K*K*Cin_p, Cout_p)      bf16  im2col-ordered equivalent-conv weights (resident)
    scale_ref: (1, Cout_p)              f32   fused BatchNorm scale
    shift_ref: (1, Cout_p)              f32   fused BatchNorm shift (conv bias folded in)
    o_ref    : (1, tile_h*W_out, Cout_p) f32  lane-dense output slab
    """
    xm = xm_ref[0]                                                    # (tile_h, Wp, Cin_p)
    if halo > 0:
        full = jnp.concatenate([xm, xh_ref[0, :halo]], axis=0)        # (tile_h+halo, Wp, Cin_p)
    else:
        full = xm

    # im2col: gather the K*K dilated taps (lane-aligned since Cin_p % 128 == 0) and do a single
    # deep MXU matmul instead of K*K shallow ones.
    taps = [full[kh * d:kh * d + tile_h, kw * d:kw * d + W_out, :]
            for kh in range(K) for kw in range(K)]
    cols = jnp.concatenate(taps, axis=-1)                             # (tile_h, W_out, K*K*Cin_p)
    a = cols.reshape(tile_h * W_out, K * K * Cin_p)

    y = jnp.dot(a, w_ref[...], preferred_element_type=jnp.float32)    # (tile_h*W_out, Cout_p) f32
    y = y * scale_ref[...] + shift_ref[...]                           # fused BatchNorm (eval) + bias
    o_ref[0] = jnp.maximum(y, 0.0).astype(o_ref.dtype)                # ReLU


def conv_transpose_block_forward(x_nchw, weight_t, conv_bias,
                                 gamma, beta, running_mean, running_var,
                                 *, dilation=1, eps=1e-5, tile_h=None,
                                 vmem_budget_bytes=8 * 1024 * 1024):
    """Forward of ConvTransposeBlock (eval mode). x_nchw: (N, Cin, H, W) f32 -> (N, Cout, H_out, W_out) f32."""
    N, Cin, H, W = x_nchw.shape
    Cin_w, Cout, K, K2 = weight_t.shape
    assert Cin_w == Cin and K == K2
    d = int(dilation)
    p = d                                          # module uses padding=dilation
    pad_eq = d * (K - 1) - p                       # equivalent standard-conv padding
    assert pad_eq >= 0, "padding > dilation*(K-1) is not supported"

    # PyTorch ConvTranspose2d output size (stride=1, output_padding=0).
    H_out = (H - 1) - 2 * p + d * (K - 1) + 1
    W_out = (W - 1) - 2 * p + d * (K - 1) + 1
    halo = (K - 1) * d                             # extra rows needed below each output row tile
    Wp = W_out + halo                              # = W + 2*pad_eq

    Cin_p = _round_up(Cin, _LANE)
    Cout_p = _round_up(Cout, _LANE)

    if tile_h is None:
        tile_h = _pick_tile_h(H_out, W_out, Wp, Cin_p, Cout_p, K, halo, vmem_budget_bytes)
    assert H_out % tile_h == 0 and tile_h >= halo, (tile_h, H_out, halo)
    n_h = H_out // tile_h
    Hp = (n_h + 1) * tile_h                        # one extra all-pad block keeps the halo fetch in-bounds

    # Fused BatchNorm (eval) affine with conv bias folded in; pad channels to the lane width.
    scale = (gamma / jnp.sqrt(running_var + eps)).astype(jnp.float32)       # (Cout,)
    shift = (beta + (conv_bias - running_mean) * scale).astype(jnp.float32)
    scale_p = jnp.pad(scale.reshape(1, Cout), ((0, 0), (0, Cout_p - Cout)))
    shift_p = jnp.pad(shift.reshape(1, Cout), ((0, 0), (0, Cout_p - Cout)))

    # Equivalent conv weight: flip spatially, swap in/out channels, pad channels, im2col-flatten, bf16.
    w_eq = jnp.transpose(jnp.flip(weight_t, axis=(2, 3)), (2, 3, 0, 1))     # (K, K, Cin, Cout)
    w_p = jnp.pad(w_eq, ((0, 0), (0, 0), (0, Cin_p - Cin), (0, Cout_p - Cout)))
    w_flat = w_p.reshape(K * K * Cin_p, Cout_p).astype(jnp.bfloat16)

    # NCHW -> NHWC, spatial + channel zero-pad, bf16. XLA fuses transpose+pad+convert into one pass,
    # so there is no separate padded-copy pass beyond the mandatory layout conversion.
    bottom_pad = Hp - H - pad_eq
    assert bottom_pad >= pad_eq
    x_nhwc = jnp.transpose(x_nchw, (0, 2, 3, 1))
    xp = jnp.pad(x_nhwc, ((0, 0), (pad_eq, bottom_pad), (pad_eq, pad_eq), (0, Cin_p - Cin))
                 ).astype(jnp.bfloat16)            # (N, Hp, Wp, Cin_p)

    kernel = functools.partial(_convt_bn_relu_kernel, tile_h=tile_h, W_out=W_out,
                               Cin_p=Cin_p, K=K, d=d, halo=halo)

    out_flat = pl.pallas_call(
        kernel,
        out_shape=jax.ShapeDtypeStruct((N, H_out * W_out, Cout_p), jnp.float32),
        grid_spec=pltpu.PrefetchScalarGridSpec(
            num_scalar_prefetch=0,
            grid=(N, n_h),
            in_specs=[
                pl.BlockSpec((1, tile_h, Wp, Cin_p), lambda n, h: (n, h, 0, 0)),      # main rows
                pl.BlockSpec((1, tile_h, Wp, Cin_p), lambda n, h: (n, h + 1, 0, 0)),  # halo rows (next block)
                pl.BlockSpec((K * K * Cin_p, Cout_p), lambda n, h: (0, 0)),           # resident weights
                pl.BlockSpec((1, Cout_p), lambda n, h: (0, 0)),                       # BN scale
                pl.BlockSpec((1, Cout_p), lambda n, h: (0, 0)),                       # BN shift
            ],
            out_specs=pl.BlockSpec((1, tile_h * W_out, Cout_p), lambda n, h: (n, h, 0)),
        ),
        compiler_params=pltpu.CompilerParams(
            dimension_semantics=("parallel", "parallel"),
            vmem_limit_bytes=32 * 1024 * 1024,
        ),
    )(xp, xp, w_flat, scale_p, shift_p)

    # Lane-dense slab -> NHWC -> slice off channel padding -> NCHW (one fused XLA op).
    out = out_flat.reshape(N, H_out, W_out, Cout_p)[..., :Cout]
    return jnp.transpose(out, (0, 3, 1, 2))


def _reference_forward(x_nchw, weight_t, conv_bias, gamma, beta,
                       running_mean, running_var, *, dilation=1, eps=1e-5):
    """Plain-JAX reference (same eval-mode semantics). Operands are rounded through bf16 to mirror
    the kernel's MXU operand dtype, so differences are accumulation-order only."""
    Cin, Cout, K, _ = weight_t.shape
    d = int(dilation)
    p = d
    pad_eq = d * (K - 1) - p
    xr = x_nchw.astype(jnp.bfloat16).astype(jnp.float32)
    w_eq = jnp.transpose(jnp.flip(weight_t, axis=(2, 3)), (1, 0, 2, 3))     # (Cout, Cin, K, K)
    wr = w_eq.astype(jnp.bfloat16).astype(jnp.float32)
    y = lax.conv_general_dilated(
        xr, wr, window_strides=(1, 1),
        padding=((pad_eq, pad_eq), (pad_eq, pad_eq)),
        rhs_dilation=(d, d),
        dimension_numbers=("NCHW", "OIHW", "NCHW"),
        precision=lax.Precision.HIGHEST)
    y = y + conv_bias.reshape(1, Cout, 1, 1)
    y = (y - running_mean.reshape(1, Cout, 1, 1)) / jnp.sqrt(running_var.reshape(1, Cout, 1, 1) + eps)
    y = y * gamma.reshape(1, Cout, 1, 1) + beta.reshape(1, Cout, 1, 1)
    return jnp.maximum(y, 0.0)


if __name__ == "__main__":
    N, Cin, Cout, H, W, K = 2, 4, 8, 16, 16, 3

    key = jax.random.PRNGKey(0)
    k_x, k_w, k_b, k_g, k_beta = jax.random.split(key, 5)

    x = jax.random.normal(k_x, (N, Cin, H, W), dtype=jnp.float32)
    # nn.ConvTranspose2d weight shape: (in_channels, out_channels, K, K)
    weight_t = 0.1 * jax.random.normal(k_w, (Cin, Cout, K, K), dtype=jnp.float32)
    conv_bias = 0.05 * jax.random.normal(k_b, (Cout,), dtype=jnp.float32)
    # BatchNorm2d params; running stats at their default init (mean=0, var=1).
    gamma = 1.0 + 0.1 * jax.random.normal(k_g, (Cout,), dtype=jnp.float32)
    beta = 0.05 * jax.random.normal(k_beta, (Cout,), dtype=jnp.float32)
    running_mean = jnp.zeros((Cout,), jnp.float32)
    running_var = jnp.ones((Cout,), jnp.float32)

    # (dilation, tile_h): first config exercises multi-tile rows with a real neighbor-block halo,
    # second exercises dilation=2 and the VMEM-budget tile picker.
    for dil, th in ((1, 8), (2, None)):
        out = conv_transpose_block_forward(
            x, weight_t, conv_bias, gamma, beta, running_mean, running_var,
            dilation=dil, tile_h=th)
        out = jax.block_until_ready(out)

        ref = jax.block_until_ready(_reference_forward(
            x, weight_t, conv_bias, gamma, beta, running_mean, running_var, dilation=dil))

        assert out.shape == ref.shape == (N, Cout, H, W), (out.shape, ref.shape)
        max_err = float(jnp.max(jnp.abs(out - ref)))
        assert jnp.allclose(out, ref, atol=5e-3, rtol=5e-3), (dil, max_err)

    print("KERNEL_OK")
</pallas_src>

<mosaic_0001>
module attributes {stable_mosaic.version = 11 : i64} {
  func.func @_convt_bn_relu_kernel(%arg0: i32, %arg1: i32, %arg2: memref<1x8x18x128xbf16, #tpu.memory_space<vmem>>, %arg3: memref<1x8x18x128xbf16, #tpu.memory_space<vmem>>, %arg4: memref<1152x128xbf16, #tpu.memory_space<vmem>>, %arg5: memref<1x128xf32, #tpu.memory_space<vmem>>, %arg6: memref<1x128xf32, #tpu.memory_space<vmem>>, %arg7: memref<1x128x128xf32, #tpu.memory_space<vmem>>) attributes {dimension_semantics = [#tpu.dimension_semantics<parallel>, #tpu.dimension_semantics<parallel>], iteration_bounds = array<i64: 2, 2>, scalar_prefetch = 0 : i64, scratch_operands = 0 : i64, tpu.core_type = #tpu.core_type<tc>, window_params = [{transform_indices = @transform_0, window_bounds = array<i64: 1, 8, 18, 128>}, {transform_indices = @transform_1, window_bounds = array<i64: 1, 8, 18, 128>}, {pipeline_mode = #tpu.pipeline_mode<synchronous>, transform_indices = @transform_2, window_bounds = array<i64: 1152, 128>}, {pipeline_mode = #tpu.pipeline_mode<synchronous>, transform_indices = @transform_3, window_bounds = array<i64: 1, 128>}, {pipeline_mode = #tpu.pipeline_mode<synchronous>, transform_indices = @transform_4, window_bounds = array<i64: 1, 128>}, {transform_indices = @transform_5, window_bounds = array<i64: 1, 128, 128>}]} {
    %c0 = arith.constant 0 : index
    %c0_0 = arith.constant 0 : index
    %c0_1 = arith.constant 0 : index
    %c0_2 = arith.constant 0 : index
    %0 = vector.load %arg2[%c0, %c0_0, %c0_1, %c0_2] : memref<1x8x18x128xbf16, #tpu.memory_space<vmem>>, vector<1x8x18x128xbf16>
    %1 = vector.shape_cast %0 : vector<1x8x18x128xbf16> to vector<8x18x128xbf16>
    %c0_3 = arith.constant 0 : index
    %c0_4 = arith.constant 0 : index
    %c0_5 = arith.constant 0 : index
    %c0_6 = arith.constant 0 : index
    %2 = vector.load %arg3[%c0_3, %c0_4, %c0_5, %c0_6] : memref<1x8x18x128xbf16, #tpu.memory_space<vmem>>, vector<1x2x18x128xbf16>
    %3 = vector.shape_cast %2 : vector<1x2x18x128xbf16> to vector<2x18x128xbf16>
    %4 = tpu.concatenate %1, %3 in 0 : vector<8x18x128xbf16>, vector<2x18x128xbf16> -> vector<10x18x128xbf16>
    %5 = vector.extract_strided_slice %4 {offsets = [0, 0, 0], sizes = [8, 16, 128], strides = [1, 1, 1]} : vector<10x18x128xbf16> to vector<8x16x128xbf16>
    %6 = vector.extract_strided_slice %4 {offsets = [0, 1, 0], sizes = [8, 16, 128], strides = [1, 1, 1]} : vector<10x18x128xbf16> to vector<8x16x128xbf16>
    %7 = vector.extract_strided_slice %4 {offsets = [0, 2, 0], sizes = [8, 16, 128], strides = [1, 1, 1]} : vector<10x18x128xbf16> to vector<8x16x128xbf16>
    %8 = vector.extract_strided_slice %4 {offsets = [1, 0, 0], sizes = [8, 16, 128], strides = [1, 1, 1]} : vector<10x18x128xbf16> to vector<8x16x128xbf16>
    %9 = vector.extract_strided_slice %4 {offsets = [1, 1, 0], sizes = [8, 16, 128], strides = [1, 1, 1]} : vector<10x18x128xbf16> to vector<8x16x128xbf16>
    %10 = vector.extract_strided_slice %4 {offsets = [1, 2, 0], sizes = [8, 16, 128], strides = [1, 1, 1]} : vector<10x18x128xbf16> to vector<8x16x128xbf16>
    %11 = vector.extract_strided_slice %4 {offsets = [2, 0, 0], sizes = [8, 16, 128], strides = [1, 1, 1]} : vector<10x18x128xbf16> to vector<8x16x128xbf16>
    %12 = vector.extract_strided_slice %4 {offsets = [2, 1, 0], sizes = [8, 16, 128], strides = [1, 1, 1]} : vector<10x18x128xbf16> to vector<8x16x128xbf16>
    %13 = vector.extract_strided_slice %4 {offsets = [2, 2, 0], sizes = [8, 16, 128], strides = [1, 1, 1]} : vector<10x18x128xbf16> to vector<8x16x128xbf16>
    %14 = tpu.concatenate %5, %6, %7, %8, %9, %10, %11, %12, %13 in 2 : vector<8x16x128xbf16>, vector<8x16x128xbf16>, vector<8x16x128xbf16>, vector<8x16x128xbf16>, vector<8x16x128xbf16>, vector<8x16x128xbf16>, vector<8x16x128xbf16>, vector<8x16x128xbf16>, vector<8x16x128xbf16> -> vector<8x16x1152xbf16>
    %15 = vector.shape_cast %14 : vector<8x16x1152xbf16> to vector<128x1152xbf16>
    %c0_7 = arith.constant 0 : index
    %c0_8 = arith.constant 0 : index
    %16 = vector.load %arg4[%c0_7, %c0_8] : memref<1152x128xbf16, #tpu.memory_space<vmem>>, vector<1152x128xbf16>
    %cst = arith.constant dense<0.000000e+00> : vector<128x128xf32>
    %17 = tpu.matmul %15, %16, %cst {dimension_numbers = #tpu.dot_dimension_numbers<[1], [0], [0], [1], [0, 0, 1, 1], [], []>} : vector<128x1152xbf16>, vector<1152x128xbf16>, vector<128x128xf32> -> vector<128x128xf32>
    %c0_9 = arith.constant 0 : index
    %c0_10 = arith.constant 0 : index
    %18 = vector.load %arg5[%c0_9, %c0_10] : memref<1x128xf32, #tpu.memory_space<vmem>>, vector<1x128xf32>
    %19 = vector.broadcast %18 : vector<1x128xf32> to vector<128x128xf32>
    %20 = arith.mulf %17, %19 : vector<128x128xf32>
    %c0_11 = arith.constant 0 : index
    %c0_12 = arith.constant 0 : index
    %21 = vector.load %arg6[%c0_11, %c0_12] : memref<1x128xf32, #tpu.memory_space<vmem>>, vector<1x128xf32>
    %22 = vector.broadcast %21 : vector<1x128xf32> to vector<128x128xf32>
    %23 = arith.addf %20, %22 : vector<128x128xf32>
    %cst_13 = arith.constant 0.000000e+00 : f32
    %24 = vector.broadcast %cst_13 : f32 to vector<128x128xf32>
    %25 = arith.maximumf %23, %24 : vector<128x128xf32>
    %c0_14 = arith.constant 0 : index
    %c0_15 = arith.constant 0 : index
    %c0_16 = arith.constant 0 : index
    %26 = vector.load %arg7[%c0_14, %c0_15, %c0_16] : memref<1x128x128xf32, #tpu.memory_space<vmem>>, vector<1x128x128xf32>
    %27 = vector.shape_cast %26 : vector<1x128x128xf32> to vector<128x128xf32>
    %28 = vector.shape_cast %25 : vector<128x128xf32> to vector<1x128x128xf32>
    tpu.vector_store %arg7[%c0_14, %c0_15, %c0_16], %28 {strides = array<i32>} : memref<1x128x128xf32, #tpu.memory_space<vmem>>, vector<1x128x128xf32>,
    return
  }
  func.func @transform_0(%arg0: i32, %arg1: i32) -> (i32, i32, i32, i32) {
    %c0_i32 = arith.constant 0 : i32
    %c0_i32_0 = arith.constant 0 : i32
    %c0_i32_1 = arith.constant 0 : i32
    return %arg0, %arg1, %c0_i32, %c0_i32_0 : i32, i32, i32, i32
  }
  func.func @transform_1(%arg0: i32, %arg1: i32) -> (i32, i32, i32, i32) {
    %c1_i32 = arith.constant 1 : i32
    %0 = arith.addi %arg1, %c1_i32 : i32
    %c0_i32 = arith.constant 0 : i32
    %c0_i32_0 = arith.constant 0 : i32
    %c0_i32_1 = arith.constant 0 : i32
    return %arg0, %0, %c0_i32, %c0_i32_0 : i32, i32, i32, i32
  }
  func.func @transform_2(%arg0: i32, %arg1: i32) -> (i32, i32) {
    %c0_i32 = arith.constant 0 : i32
    %c0_i32_0 = arith.constant 0 : i32
    %c0_i32_1 = arith.constant 0 : i32
    return %c0_i32, %c0_i32_0 : i32, i32
  }
  func.func @transform_3(%arg0: i32, %arg1: i32) -> (i32, i32) {
    %c0_i32 = arith.constant 0 : i32
    %c0_i32_0 = arith.constant 0 : i32
    %c0_i32_1 = arith.constant 0 : i32
    return %c0_i32, %c0_i32_0 : i32, i32
  }
  func.func @transform_4(%arg0: i32, %arg1: i32) -> (i32, i32) {
    %c0_i32 = arith.constant 0 : i32
    %c0_i32_0 = arith.constant 0 : i32
    %c0_i32_1 = arith.constant 0 : i32
    return %c0_i32, %c0_i32_0 : i32, i32
  }
  func.func @transform_5(%arg0: i32, %arg1: i32) -> (i32, i32, i32) {
    %c0_i32 = arith.constant 0 : i32
    %c0_i32_0 = arith.constant 0 : i32
    return %arg0, %arg1, %c0_i32 : i32, i32, i32
  }
}

</mosaic_0001>

<bundles_post_ra>
// kernel: tpu_custom_call.1
= control target key start
LH: loop header
LB: loop body
LE: loop exit
PB: predicated region body
PF: predicated region fallthrough
CT: control target
= control target key end

     0   :  { %10 = vsyncpa [#allocation3], 0  ;;  %s3285_s0 = inlined_call_operand.vmem [shape: bf16[2,24,18,128], index: 0, kind: input, shape index: {}]   ;;  %s3286_s1 = inlined_call_operand.vmem [shape: bf16[2,24,18,128], index: 1, kind: input, shape index: {}]   ;;  %s3287_s2 = inlined_call_operand.vmem [shape: bf16[1152,128], index: 2, kind: input, shape index: {}]   ;;  %s3288_s3 = inlined_call_operand.vmem [shape: f32[1,128], index: 3, kind: input, shape index: {}]   ;;  %s3289_s4 = inlined_call_operand.vmem [shape: f32[1,128], index: 4, kind: input, shape index: {}]   ;;  %s3290_s5 = inlined_call_operand.hbm [shape: f32[2,256,128], index: 5, kind: output, shape index: {}]  }
   0x1   :  { %12 = vsyncpa [#allocation3 + $0x1], 0  ;;  %s2586_s18 = smov 0   ;;  %s2588_s19 = smov 0  }
   0x2   :  { %s2590_s20 = smov 0   ;;  %s2592_s21 = smov 0  }
   0x3   :  { %s2594_s22 = smov 0   ;;  %s2596_s23 = smov 0  }
   0x4   :  { %s2598_s24 = smov 0   ;;  %s2600_s25 = smov 0  }
   0x5 LB: > { %s1857_s26 = sadd.s32 4294967295, %s2551_s25   ;;  %s1858_s27 = sadd.s32 4294967294, %s2551_s25   ;;  %s2551_s25 = sphi %s2600_s25, %s18_s25   ;;  %s2547_s24 = sphi %s2598_s24, %s3307_s24   ;;  %s2543_s23 = sphi %s2596_s23, %s3306_s23   ;;  %s2539_s22 = sphi %s2594_s22, %s3305_s22   ;;  %s2535_s21 = sphi %s2592_s21, %s3304_s21   ;;  %s2531_s20 = sphi %s2590_s20, %s3303_s20   ;;  %s2527_s19 = sphi %s2588_s19, %s3302_s19   ;;  %s2523_s18 = sphi %s2586_s18, %s3301_s18  }
   0x6   : > { %s27_s28 = sadd.s32 1, %s2543_s23  ;;  %s30_s29 = sadd.s32 1, %s2547_s24 }
   0x7   : > { %p28_p0 = scmp.ge.s32.totalorder %s27_s28, 2  ;;  %p170_p1 = scmp.ne.s32.totalorder %s2531_s20, %s2527_s19 }
   0x8   : > { %p171_p2 = scmp.eq.s32.totalorder %s1857_s26, 3  ;;  %p176_p5 = scmp.ne.s32.totalorder %s2527_s19, %s2523_s18 }
   0x9   : > { %s3309_s28 = smov (%p28_p0, %s27_s28), 0  ;;  %s3311_s29 = smov (!%p28_p0, %s30_s29), %s2547_s24 }
   0xa   : > { %3293 = sst [smem:[#allocation5_spill]] %s3309_s28  ;;  %s156_s30 = ssub.s32 %s2543_s23, %s3309_s28 }
   0xb   : > { %p2637_p3 = por %p171_p2, %p170_p1  ;;  %p32_p4 = scmp.ge.s32.totalorder %s3311_s29, 2 }
   0xc   : > { %p177_p6 = scmp.eq.s32.totalorder %s1858_s27, 3  ;;  %p1861_p7 = scmp.ge.s32.totalorder %s2551_s25, 1 }
   0xd   : > { %s3313_s29 = smov (%p32_p4, %s3311_s29), 0  ;;  %p234_p9 = scmp.lt.s32.totalorder %s2551_s25, 5 }
   0xe   : > { %3295 = sst [smem:[#allocation6_spill]] %s3313_s29  ;;  %p2646_p8 = por %p177_p6, %p176_p5 }
   0xf   : > { %s155_s8 = ssub.s32 %s2547_s24, %s3313_s29  ;;  %s160_s9 = sadd.s32 1, %s2531_s20 }
  0x10   : > { %s157_s10 = sor.u32 %s156_s30, %s155_s8  ;;  %p235_p10 = pnand %p1861_p7, %p234_p9 }
  0x11   : > { %p158_p11 = scmp.eq.s32.totalorder %s157_s10, 0  ;;  %v2365_v0 = vld [vmem:[%s3287_s2 + $0x40] sm:$0xff] (!%p235_p10)   ;;  %v2369_v4 = vld [vmem:[%s3287_s2 + $0x48] sm:$0xff] (!%p235_p10)   ;;  %v2373_v8 = vld [vmem:[%s3287_s2 + $0x50] sm:$0xff] (!%p235_p10)   ;;  %s2685_s26 = sshll.u32 (!%p235_p10), %s2535_s21, 3  ;;  %vm511_vm1 = vcmask (!%p235_p10), 1046528  }
  0x12   : > { %238 = sbr.rel (%p235_p10) target bundleno = 429 (0x1ad), region = 40  ;;  %v2366_v1 = vld [vmem:[%s3287_s2 + $0xc0] sm:$0xff] (!%p235_p10)   ;;  %1969 = vmatprep.subr.bf16.mxu0 (!%p235_p10), %v2365_v0  ;;  %v2370_v5 = vld [vmem:[%s3287_s2 + $0xc8] sm:$0xff] (!%p235_p10)   ;;  %v2374_v9 = vld [vmem:[%s3287_s2 + $0xd0] sm:$0xff] (!%p235_p10)   ;;  %p279_p12 = scmp.lt.s32.totalorder (!%p235_p10), %s2539_s22, 1 }
  0x13   : > { %s2655_s11 = scalar_select %p158_p11, %s2531_s20, %s160_s9  }
  0x14   : > { %v2367_v2 = vld [vmem:[%s3287_s2] sm:$0xff] (!%p235_p10)   ;;  %2033 = vmatprep.subr.bf16.mxu1 (!%p235_p10), %v2366_v1  ;;  %v2371_v6 = vld [vmem:[%s3287_s2 + $0x8] sm:$0xff] (!%p235_p10)   ;;  %v2375_v10 = vld [vmem:[%s3287_s2 + $0x10] sm:$0xff] (!%p235_p10)   ;;  %p281_p13 = scmp.lt.s32.totalorder (!%p235_p10), %s2685_s26, 23  ;;  %s1968_s28 = sadd.s32 (!%p235_p10), 8, %s2685_s26 }
  0x15   : > { %v2368_v3 = vld [vmem:[%s3287_s2 + $0x80] sm:$0xff] (!%p235_p10)   ;;  %1970 = vmatpush3.bf16.msra.mxu0 (!%p235_p10), %v2367_v2  ;;  %v2372_v7 = vld [vmem:[%s3287_s2 + $0x88] sm:$0xff] (!%p235_p10)   ;;  %v2376_v11 = vld [vmem:[%s3287_s2 + $0x90] sm:$0xff] (!%p235_p10)   ;;  %p293_p0 = scmp.lt.s32.totalorder (!%p235_p10), %s1968_s28, 23  ;;  %vm406_vm0 = vsmask.f32 (!%p235_p10), 7424 }
  0x16   : > { %2034 = vmatpush3.bf16.msra.mxu1 (!%p235_p10), %v2368_v3  ;;  %1971 = vmatprep.subr.bf16.mxu0 (!%p235_p10), %v2369_v4  ;;  %v2377_v12 = vld [vmem:[%s3287_s2 + $0x58] sm:$0xff] (!%p235_p10)   ;;  %v2381_v16 = vld [vmem:[%s3287_s2 + $0x60] sm:$0xff] (!%p235_p10)   ;;  %v2385_v20 = vld [vmem:[%s3287_s2 + $0x68] sm:$0xff] (!%p235_p10)  }
  0x17   : > { %2035 = vmatprep.subr.bf16.mxu1 (!%p235_p10), %v2370_v5  ;;  %v2378_v13 = vld [vmem:[%s3287_s2 + $0xd8] sm:$0xff] (!%p235_p10)   ;;  %v2382_v17 = vld [vmem:[%s3287_s2 + $0xe0] sm:$0xff] (!%p235_p10)   ;;  %v2386_v21 = vld [vmem:[%s3287_s2 + $0xe8] sm:$0xff] (!%p235_p10)  }
  0x18   : > { %v2379_v14 = vld [vmem:[%s3287_s2 + $0x18] sm:$0xff] (!%p235_p10)   ;;  %v2383_v18 = vld [vmem:[%s3287_s2 + $0x20] sm:$0xff] (!%p235_p10)   ;;  %v2387_v22 = vld [vmem:[%s3287_s2 + $0x28] sm:$0xff] (!%p235_p10)  }
  0x19   : > { %1972 = vmatpush3.bf16.msra.mxu0 %v2371_v6  ;;  %s2708_s30 = scalar_select %p279_p12, %s2539_s22, 1  ;;  %v2380_v15 = vld [vmem:[%s3287_s2 + $0x98] sm:$0xff]   ;;  %v2384_v19 = vld [vmem:[%s3287_s2 + $0xa0] sm:$0xff]   ;;  %v2388_v23 = vld [vmem:[%s3287_s2 + $0xa8] sm:$0xff]  }
  0x1a   : > { %2036 = vmatpush3.bf16.msra.mxu1 %v2372_v7  ;;  %1973 = vmatprep.subr.bf16.mxu0 %v2373_v8  ;;  %s282_s10 = scalar_select %p281_p13, %s2685_s26, 23  ;;  %v2389_v24 = vld [vmem:[%s3287_s2 + $0x70] sm:$0xff]   ;;  %v2393_v28 = vld [vmem:[%s3287_s2 + $0x78] sm:$0xff]   ;;  %v2400_v40 = vld [vmem:[%s3287_s2 + $0x140] sm:$0xff]  }
  0x1b   : > { %2037 = vmatprep.subr.bf16.mxu1 %v2374_v9  ;;  %v2390_v25 = vld [vmem:[%s3287_s2 + $0xf0] sm:$0xff]   ;;  %v2394_v29 = vld [vmem:[%s3287_s2 + $0xf8] sm:$0xff]   ;;  %s3315_s28 = smov (!%p293_p0, %s1968_s28), 23  ;;  %v2401_v43 = vld [vmem:[%s3287_s2 + $0x1c0] sm:$0xff]   ;;  %s3298_s8 = smul.u32 72, %s2708_s30 }
  0x1c   : > { %s2289_s12 = smul.u32 3, %s282_s10  ;;  %v2391_v26 = vld [vmem:[%s3287_s2 + $0x30] sm:$0xff]   ;;  %v2395_v30 = vld [vmem:[%s3287_s2 + $0x38] sm:$0xff]   ;;  %v2402_v45 = vld [vmem:[%s3287_s2 + $0x100] sm:$0xff]  }
  0x1d   : > { %1974 = vmatpush3.bf16.msra.mxu0 %v2375_v10  ;;  %s3297_s10 = smul.u32 72, %s2708_s30  ;;  %v2392_v27 = vld [vmem:[%s3287_s2 + $0xb0] sm:$0xff]   ;;  %v2396_v31 = vld [vmem:[%s3287_s2 + $0xb8] sm:$0xff]   ;;  %v2403_v47 = vld [vmem:[%s3287_s2 + $0x180] sm:$0xff]  }
  0x1e   : > { %2038 = vmatpush3.bf16.msra.mxu1 %v2376_v11  ;;  %1975 = vmatprep.subr.bf16.mxu0 %v2377_v12  ;;  %s2291_s13 = smul.u32 3, %s3315_s28  ;;  %v2406_v57 = vld [vmem:[%s3287_s2 + $0x148] sm:$0xff]   ;;  %v2412_v10 = vld [vmem:[%s3287_s2 + $0x150] sm:$0xff]  }
  0x1f   : > { %2039 = vmatprep.subr.bf16.mxu1 %v2378_v13  ;;  %s285_s9 = sadd.s32 %s3297_s10, %s2289_s12  ;;  %v2407_v58 = vld [vmem:[%s3287_s2 + $0x1c8] sm:$0xff]   ;;  %v2413_v13 = vld [vmem:[%s3287_s2 + $0x1d0] sm:$0xff]   ;;  %s1963_s10 = sshll.u32 %s2539_s22, 5 }
  0x20   : > { %s1864_s27 = sshll.u32 %s285_s9, 2  ;;  %v2408_v63 = vld [vmem:[%s3287_s2 + $0x108] sm:$0xff]   ;;  %s2893_s12 = sadd.s32 %s2291_s13, %s3298_s8 }
  0x21   : > { %1976 = vmatpush3.bf16.msra.mxu0 %v2379_v14  ;;  %s2766_s17 = scalar_lea.vmem %s3285_s0, %s1864_s27  ;;  %v2409_v0 = vld [vmem:[%s3287_s2 + $0x188] sm:$0xff]   ;;  %v2414_v14 = vld [vmem:[%s3287_s2 + $0x110] sm:$0xff]   ;;  %s1866_s28 = sshll.u32 %s2893_s12, 2 }
  0x22   : > { %2040 = vmatpush3.bf16.msra.mxu1 %v2380_v15  ;;  %1977 = vmatprep.subr.bf16.mxu0 %v2381_v16  ;;  %v2397_v32 = vld [vmem:[%s2766_s17] sm:$0xff]   ;;  %v2398_v33 = vld [vmem:[%s2766_s17 + $0x8] ss:$0 sps:$4 sm:$0x11]   ;;  %v2399_v34 = vld [vmem:[%s2766_s17 + $0xc] sm:$0xff]   ;;  %s2960_s16 = scalar_lea.vmem %s3286_s1, %s1866_s28  ;;  %s1962_s27 = sshll.u32 %s2535_s21, 4 }
  0x23   : > { %2041 = vmatprep.subr.bf16.mxu1 %v2382_v17  ;;  %v408_v35 = vshrl.u32 %v2397_v32, 16  ;;  %v410_v36 = vshll.u32 %v2397_v32, 16  ;;  %v415_v37 = vshll.u32 %v2398_v33, 16  ;;  %v512_v38 = vrot.slane %v2397_v32, 1  ;;  %1301 = vmatprep.mubr.bf16.mxu1 %v2399_v34  ;;  %v2793_v52 = vld [vmem:[%s2766_s17 + $0x18] sm:$0xff]   ;;  %v2818_v4 = vld [vmem:[%s2766_s17 + $0x24] sm:$0xff]   ;;  %s1748_s21 = sadd.s32 %s1963_s10, %s1962_s27 }
  0x24   : > { %v513_v39 = vrot.slane %v2398_v33, 1  ;;  %v420_v48 = vshrl.u32 %v2399_v34, 16  ;;  %v2404_v49 = vld [vmem:[%s2766_s17 + $0x14] ss:$0 sps:$4 sm:$0x11]   ;;  %v422_v50 = vshll.u32 %v2399_v34, 16 }
  0x25   : > { %1978 = vmatpush3.bf16.msra.mxu0 %v2383_v18  ;;  %v412_v41 = vrot.slane %v410_v36, 1  ;;  %v417_v42 = vrot.slane %v415_v37, 1  ;;  %v515_v53 = vrot.slane %v2399_v34, 1  ;;  %v427_v55 = vshll.u32 %v2404_v49, 16  ;;  %v2415_v18 = vld [vmem:[%s3287_s2 + $0x190] sm:$0xff]   ;;  %s1964_s22 = sshll.u32 %s1748_s21, 7 }
  0x26   : > { %2042 = vmatpush3.bf16.msra.mxu1 %v2384_v19  ;;  %1979 = vmatprep.subr.bf16.mxu0 %v2385_v20  ;;  %v514_v44 = vsel %vm511_vm1, %v512_v38, %v513_v39  ;;  %v424_v54 = vrot.slane %v422_v50, 1  ;;  %v516_v56 = vrot.slane %v2404_v49, 1  ;;  %v432_v59 = vshrl.u32 %v2793_v52, 16  ;;  %v2410_v3 = vld [vmem:[%s2766_s17 + $0x20] ss:$0 sps:$4 sm:$0x11]   ;;  %s3224_s29 = scalar_lea.hbm %s3290_s5, %s1964_s22 }
  0x27   : > { %2043 = vmatprep.subr.bf16.mxu1 %v2386_v21  ;;  %v413_v46 = vor.u32 %v412_v41, %v408_v35  ;;  %v429_v61 = vrot.slane %v427_v55, 1  ;;  %v434_v1 = vshll.u32 %v2793_v52, 16  ;;  %v518_v6 = vrot.slane %v2793_v52, 1  ;;  %v2416_v19 = vld [vmem:[%s2766_s17 + $0x2c] ss:$0 sps:$4 sm:$0x11]  }
  0x28   : > { %v425_v60 = vor.u32 %v424_v54, %v420_v48  ;;  %v2804_v62 = vsel %vm511_vm1, %v515_v53, %v516_v56  ;;  %v439_v7 = vshll.u32 %v2410_v3, 16  ;;  %v519_v8 = vrot.slane %v2410_v3, 1  ;;  %v2847_v21 = vld [vmem:[%s2766_s17 + $0x30] sm:$0xff]   ;;  %v2422_v33 = vld [vmem:[%s2766_s17 + $0x38] ss:$0 sps:$4 sm:$0x11]  }
  0x29   : > { %1980 = vmatpush3.bf16.msra.mxu0 %v2387_v22  ;;  %v418_v51 = vsel %vm406_vm0, %v413_v46, %v417_v42  ;;  %v436_v5 = vrot.slane %v434_v1, 1  ;;  %v444_v11 = vshrl.u32 %v2818_v4, 16  ;;  %v446_v15 = vshll.u32 %v2818_v4, 16  ;;  %v2872_v35 = vld [vmem:[%s2766_s17 + $0x3c] sm:$0xff]   ;;  %v2906_v53 = vld [vmem:[%s2766_s17 + $0x48] sm:$0xff]   ;;  %s2553_s9 = smov [#allocation2]  }
  0x2a   : > { %2044 = vmatpush3.bf16.msra.mxu1 %v2388_v23  ;;  %1981 = vmatprep.subr.bf16.mxu0 %v2389_v24  ;;  %v2814_v2 = vsel %vm406_vm0, %v425_v60, %v429_v61  ;;  %v441_v12 = vrot.slane %v439_v7, 1  ;;  %v2839_v17 = vsel %vm511_vm1, %v518_v6, %v519_v8  ;;  %v451_v22 = vshll.u32 %v2416_v19, 16  ;;  %v2425_v42 = vld [vmem:[%s3287_s2 + $0x1e0] sm:$0xff]   ;;  %v2430_v55 = vld [vmem:[%s3287_s2 + $0x168] sm:$0xff]   ;;  %v2933_v6 = vld [vmem:[%s2766_s17 + $0x54] sm:$0xff]   ;;  %s2461_s12 = sshll.u32 %s2553_s9, 4  ;;  %s2462_s12 = int_to_ptr.vmem [resolvable:$false] %s2461_s12 }
  0x2b   : > { %2045 = vmatprep.subr.bf16.mxu1 %v2390_v25  ;;  %1204 = vmatprep.mubr.bf16.mxu0 %v418_v51  ;;  %v437_v9 = vor.u32 %v436_v5, %v432_v59  ;;  %v448_v20 = vrot.slane %v446_v15, 1  ;;  %v521_v23 = vrot.slane %v2818_v4, 1  ;;  %v522_v24 = vrot.slane %v2416_v19, 1  ;;  %v2418_v25 = vld [vmem:[%s3287_s2 + $0x158] sm:$0xff]   ;;  %v2427_v46 = vld [vmem:[%s3287_s2 + $0x1a0] sm:$0xff]   ;;  %v2432_v61 = vld [vmem:[%s3287_s2 + $0x128] sm:$0xff]  }
  0x2c   : > { %v463_v37 = vshll.u32 %v2422_v33, 16  ;;  %v524_v38 = vrot.slane %v2847_v21, 1  ;;  %v525_v39 = vrot.slane %v2422_v33, 1  ;;  %v468_v49 = vshrl.u32 %v2872_v35, 16  ;;  %v2439_v15 = vld [vmem:[%s3287_s2 + $0x1b0] sm:$0xff]   ;;  %v2446_v33 = vld [vmem:[%s3287_s2 + $0x200] sm:$0xff]  }
  0x2d   : > { %1982 = vmatpush3.bf16.msra.mxu0 %v2391_v26  ;;  %v2836_v16 = vsel %vm406_vm0, %v437_v9, %v441_v12  ;;  %v449_v26 = vor.u32 %v448_v20, %v444_v11  ;;  %v2876_v36 = vsel %vm511_vm1, %v521_v23, %v522_v24  ;;  %v470_v50 = vshll.u32 %v2872_v35, 16  ;;  %v2434_v3 = vld [vmem:[%s2766_s17 + $0x50] ss:$0 sps:$4 sm:$0x11]   ;;  %s2463_s8 = scalar_lea.vmem %s2462_s12, 4096 }
  0x2e   : > { %2046 = vmatpush3.bf16.msra.mxu1 %v2392_v27  ;;  %1983 = vmatprep.subr.bf16.mxu0 %v2393_v28  ;;  %v453_v27 = vrot.slane %v451_v22, 1  ;;  %v2419_v28 = vld [vmem:[%s3287_s2 + $0x1d8] sm:$0xff]   ;;  %v2915_v56 = vsel %vm511_vm1, %v524_v38, %v525_v39  ;;  %v480_v5 = vshrl.u32 %v2906_v53, 16  ;;  %v487_v9 = vshll.u32 %v2434_v3, 16  ;;  %v2437_v11 = vld [vmem:[%s3287_s2 + $0x1f0] sm:$0xff]  }
  0x2f   : > { %2047 = vmatprep.subr.bf16.mxu1 %v2394_v29  ;;  %v2420_v29 = vld [vmem:[%s3287_s2 + $0x118] sm:$0xff]   ;;  %v472_v54 = vrot.slane %v470_v50, 1  ;;  %v2438_v12 = vld [vmem:[%s3287_s2 + $0x130] sm:$0xff]   ;;  %v494_v20 = vshll.u32 %v2933_v6, 16  ;;  %v530_v22 = vrot.slane %v2906_v53, 1  ;;  %v531_v23 = vrot.slane %v2434_v3, 1 }
  0x30   : > { %v2440_v19 = vld [vmem:[%s2766_s17 + $0x5c] ss:$0 sps:$4 sm:$0x11]   ;;  %v492_v24 = vshrl.u32 %v2933_v6, 16 }
  0x31   : > { %1984 = vmatpush3.bf16.msra.mxu0 %v2395_v30  ;;  %v456_v30 = vshrl.u32 %v2847_v21, 16  ;;  %v473_v59 = vor.u32 %v472_v54, %v468_v49 }
  0x32   : > { %2048 = vmatpush3.bf16.msra.mxu1 %v2396_v31  ;;  %2097 = vmatprep.subr.bf16.mxu0 %v2400_v40  ;;  %v2863_v31 = vsel %vm406_vm0, %v449_v26, %v453_v27  ;;  %v2424_v40 = vld [vmem:[%s3287_s2 + $0x160] sm:$0xff]   ;;  %v496_v26 = vrot.slane %v494_v20, 1  ;;  %v2443_v27 = vld [vmem:[%s3287_s2 + $0x1f8] sm:$0xff]  }
  0x33   : > { %2161 = vmatprep.subr.bf16.mxu1 %v2401_v43  ;;  %v465_v43 = vrot.slane %v463_v37, 1  ;;  %v2992_v37 = vld [vmem:[%s2960_s16] sm:$0xff]  }
  0x34   : > { %1205 = vmatmul.mubr.bf16.vlgmr.msra.gmra.mrb[0].mxu0 %v2397_v32  ;;  %v2421_v32 = vld [vmem:[%s3287_s2 + $0x198] sm:$0xff]   ;;  %v497_v38 = vor.u32 %v496_v26, %v492_v24 }
  0x35   : > { %1302 = vmatmul.mubr.bf16.vlgmr.msra.gmra.mrb[0].mxu1 %v514_v44  ;;  %2098 = vmatpush3.bf16.msra.mxu0 %v2402_v45  ;;  %v2426_v44 = vld [vmem:[%s3287_s2 + $0x120] sm:$0xff]  }
  0x36   : > { %2162 = vmatpush3.bf16.msra.mxu1 %v2403_v47  ;;  %1309 = vmatprep.mubr.bf16.mxu1 %v2793_v52  ;;  %v2428_v47 = vld [vmem:[%s2766_s17 + $0x44] ss:$0 sps:$4 sm:$0x11]  }
  0x37   : > { %2099 = vmatprep.subr.bf16.mxu0 %v2406_v57  ;;  %2163 = vmatprep.subr.bf16.mxu1 %v2407_v58  ;;  %v475_v51 = vshll.u32 %v2428_v47, 16  ;;  %v527_v57 = vrot.slane %v2872_v35, 1  ;;  %v2431_v58 = vld [vmem:[%s3287_s2 + $0x1e8] sm:$0xff]   ;;  %v528_v1 = vrot.slane %v2428_v47, 1 }
  0x38   : > { %1212 = vmatprep.mubr.bf16.mxu0 %v2814_v2 }
  0x39   : > { %2100 = vmatpush3.bf16.msra.mxu0 %v2408_v63  ;;  %v477_v60 = vrot.slane %v475_v51, 1  ;;  %v2433_v63 = vld [vmem:[%s3287_s2 + $0x1a8] sm:$0xff]  }
  0x3a   : > { %2164 = vmatpush3.bf16.msra.mxu1 %v2409_v0  ;;  %2101 = vmatprep.subr.bf16.mxu0 %v2412_v10  ;;  %v482_v0 = vshll.u32 %v2906_v53, 16  ;;  %v2436_v10 = vld [vmem:[%s3287_s2 + $0x170] sm:$0xff]  }
  0x3b   : > { %2165 = vmatprep.subr.bf16.mxu1 %v2413_v13  ;;  %v2936_v7 = vsel %vm406_vm0, %v473_v59, %v477_v60  ;;  %v2950_v13 = vsel %vm511_vm1, %v527_v57, %v528_v1  ;;  %v2447_v60 = vld [vmem:[%s3287_s2 + $0x208] sm:$0xff]  }
  0x3c   : > { %1213 = vmatmul.mubr.bf16.gmra.mrb[4].mxu0 %v2399_v34  ;;  %v458_v34 = vshll.u32 %v2847_v21, 16  ;;  %v484_v8 = vrot.slane %v482_v0, 1 }
  0x3d   : > { %1310 = vmatmul.mubr.bf16.gmra.mrb[4].mxu1 %v2804_v62  ;;  %1220 = vmatprep.mubr.bf16.mxu0 %v2836_v16 }
  0x3e   : > { %1317 = vmatprep.mubr.bf16.mxu1 %v2818_v4  ;;  %2102 = vmatpush3.bf16.msra.mxu0 %v2414_v14  ;;  %v460_v41 = vrot.slane %v458_v34, 1  ;;  %v489_v14 = vrot.slane %v487_v9, 1  ;;  %v2989_v34 = vsel %vm511_vm1, %v530_v22, %v531_v23 }
  0x3f   : > { %2166 = vmatpush3.bf16.msra.mxu1 %v2415_v18  ;;  %2103 = vmatprep.subr.bf16.mxu0 %v2418_v25  ;;  %v485_v18 = vor.u32 %v484_v8, %v480_v5  ;;  %v2442_v25 = vld [vmem:[%s3287_s2 + $0x178] sm:$0xff]  }
  0x40   : > { %2167 = vmatprep.subr.bf16.mxu1 %v2419_v28  ;;  %v461_v45 = vor.u32 %v460_v41, %v456_v30  ;;  %v2444_v30 = vld [vmem:[%s3287_s2 + $0x138] sm:$0xff]   ;;  %v534_v41 = vrot.slane %v2440_v19, 1 }
  0x41   : > { %v2975_v28 = vsel %vm406_vm0, %v485_v18, %v489_v14 }
  0x42   : > { %2104 = vmatpush3.bf16.msra.mxu0 %v2420_v29  ;;  %v2901_v48 = vsel %vm406_vm0, %v461_v45, %v465_v43  ;;  %v499_v29 = vshll.u32 %v2440_v19, 16  ;;  %v2455_v45 = vld [vmem:[%s2960_s16 + $0x14] ss:$0 sps:$4 sm:$0x11]  }
  0x43   : > { %2168 = vmatpush3.bf16.msra.mxu1 %v2421_v32  ;;  %2105 = vmatprep.subr.bf16.mxu0 %v2424_v40  ;;  %v2445_v32 = vld [vmem:[%s3287_s2 + $0x1b8] sm:$0xff]   ;;  %v533_v40 = vrot.slane %v2933_v6, 1  ;;  %v587_v49 = vshll.u32 %v2455_v45, 16  ;;  %v593_v51 = vrot.slane %v2455_v45, 1 }
  0x44   : > { %1221 = vmatmul.mubr.bf16.gmra.mrb[8].mxu0 %v2793_v52  ;;  %2169 = vmatprep.subr.bf16.mxu1 %v2425_v42  ;;  %v501_v39 = vrot.slane %v499_v29, 1 }
  0x45   : > { %1318 = vmatmul.mubr.bf16.gmra.mrb[8].mxu1 %v2839_v17  ;;  %1228 = vmatprep.mubr.bf16.mxu0 %v2863_v31  ;;  %v3003_v43 = vsel %vm511_vm1, %v533_v40, %v534_v41 }
  0x46   : > { %1325 = vmatprep.mubr.bf16.mxu1 %v2847_v21  ;;  %2106 = vmatpush3.bf16.msra.mxu0 %v2426_v44  ;;  %v2998_v42 = vsel %vm406_vm0, %v497_v38, %v501_v39  ;;  %v3006_v44 = vld [vmem:[%s2960_s16 + $0xc] sm:$0xff]  }
  0x47   : > { %2170 = vmatpush3.bf16.msra.mxu1 %v2427_v46  ;;  %2107 = vmatprep.subr.bf16.mxu0 %v2430_v55  ;;  %v580_v46 = vshrl.u32 %v3006_v44, 16  ;;  %v582_v47 = vshll.u32 %v3006_v44, 16  ;;  %v592_v50 = vrot.slane %v3006_v44, 1  ;;  %v589_v55 = vrot.slane %v587_v49, 1 }
  0x48   : > { %2171 = vmatprep.subr.bf16.mxu1 %v2431_v58 }
  0x49   : > { %v584_v54 = vrot.slane %v582_v47, 1  ;;  %v3015_v57 = vsel %vm511_vm1, %v592_v50, %v593_v51 }
  0x4a   : > { %2108 = vmatpush3.bf16.msra.mxu0 %v2432_v61  ;;  %v2448_v61 = vld [vmem:[%s3287_s2 + $0x210] sm:$0xff]  }
  0x4b   : > { %2172 = vmatpush3.bf16.msra.mxu1 %v2433_v63  ;;  %2109 = vmatprep.subr.bf16.mxu0 %v2436_v10  ;;  %v585_v58 = vor.u32 %v584_v54, %v580_v46  ;;  %v556_v63 = vshll.u32 %v2992_v37, 16 }
  0x4c   : > { %1229 = vmatmul.mubr.bf16.gmra.mrb[12].mxu0 %v2818_v4  ;;  %2173 = vmatprep.subr.bf16.mxu1 %v2437_v11 }
  0x4d   : > { %1326 = vmatmul.mubr.bf16.gmra.mrb[12].mxu1 %v2876_v36  ;;  %1236 = vmatprep.mubr.bf16.mxu0 %v2901_v48  ;;  %v3020_v59 = vsel %vm406_vm0, %v585_v58, %v589_v55  ;;  %v558_v0 = vrot.slane %v556_v63, 1 }
  0x4e   : > { %1333 = vmatprep.mubr.bf16.mxu1 %v2872_v35  ;;  %2110 = vmatpush3.bf16.msra.mxu0 %v2438_v12 }
  0x4f   : > { %2174 = vmatpush3.bf16.msra.mxu1 %v2439_v15  ;;  %2111 = vmatprep.subr.bf16.mxu0 %v2442_v25 }
  0x50   : > { %2175 = vmatprep.subr.bf16.mxu1 %v2443_v27 }
  0x52   : > { %2112 = vmatpush3.bf16.msra.mxu0 %v2444_v30 }
  0x53   : > { %2176 = vmatpush3.bf16.msra.mxu1 %v2445_v32  ;;  %2241 = vmatprep.subr.bf16.mxu0 %v2446_v33 }
  0x54   : > { %1237 = vmatmul.mubr.bf16.gmra.mrb[16].mxu0 %v2847_v21  ;;  %2273 = vmatprep.subr.bf16.mxu1 %v2446_v33 }
  0x55   : > { %1334 = vmatmul.mubr.bf16.gmra.mrb[16].mxu1 %v2915_v56  ;;  %1244 = vmatprep.mubr.bf16.mxu0 %v2936_v7 }
  0x56   : > { %1341 = vmatprep.mubr.bf16.mxu1 %v2906_v53 }
  0x5c   : > { %1245 = vmatmul.mubr.bf16.gmra.mrb[20].mxu0 %v2872_v35 }
  0x5d   : > { %1342 = vmatmul.mubr.bf16.gmra.mrb[20].mxu1 %v2950_v13  ;;  %1252 = vmatprep.mubr.bf16.mxu0 %v2975_v28 }
  0x5e   : > { %1349 = vmatprep.mubr.bf16.mxu1 %v2933_v6 }
  0x64   : > { %1253 = vmatmul.mubr.bf16.gmra.mrb[24].mxu0 %v2906_v53 }
  0x65   : > { %1350 = vmatmul.mubr.bf16.gmra.mrb[24].mxu1 %v2989_v34  ;;  %1260 = vmatprep.mubr.bf16.mxu0 %v2998_v42 }
  0x66   : > { %1357 = vmatprep.mubr.bf16.mxu1 %v2992_v37 }
  0x6c   : > { %1261 = vmatmul.mubr.bf16.gmra.mrb[28].mxu0 %v2933_v6 }
  0x6d   : > { %1358 = vmatmul.mubr.bf16.gmra.mrb[28].mxu1 %v3003_v43  ;;  %1398 = vmatprep.mubr.bf16.mxu0 %v2804_v62  ;;  %v2450_v62 = vld [vmem:[%s3287_s2 + $0x220] sm:$0xff]  }
  0x6e   : > { %1495 = vmatprep.mubr.bf16.mxu1 %v2836_v16 }
  0x74   : > { %1399 = vmatmul.mubr.bf16.vlgmr.msra.gmra.mrb[32].mxu0 %v2814_v2  ;;  %v2451_v2 = vld [vmem:[%s3287_s2 + $0x228] sm:$0xff]  }
  0x75   : > { %1496 = vmatmul.mubr.bf16.vlgmr.msra.gmra.mrb[32].mxu1 %v2793_v52  ;;  %2242 = vmatpush3.bf16.msra.mxu0 %v2446_v33  ;;  %v2449_v52 = vld [vmem:[%s3287_s2 + $0x218] sm:$0xff]  }
  0x76   : > { %2281 = vmatpush3.bf16.msra.mxu1 %v2446_v33  ;;  %1503 = vmatprep.mubr.bf16.mxu1 %v2863_v31 }
  0x77   : > { %2274 = vmatprep.subr.bf16.mxu1 %v2447_v60  ;;  %1406 = vmatprep.mubr.bf16.mxu0 %v2839_v17 }
  0x78   : > { %2243 = vmatprep.subr.bf16.mxu0 %v2447_v60 }
  0x79   : > { %2244 = vmatpush3.bf16.msra.mxu0 %v2447_v60 }
  0x7a   : > { %2282 = vmatpush3.bf16.msra.mxu1 %v2447_v60  ;;  %2245 = vmatprep.subr.bf16.mxu0 %v2448_v61 }
  0x7b   : > { %2275 = vmatprep.subr.bf16.mxu1 %v2448_v61 }
  0x7c   : > { %1407 = vmatmul.mubr.bf16.gmra.mrb[36].mxu0 %v2836_v16  ;;  %v2456_v16 = vld [vmem:[%s3287_s2 + $0x238] sm:$0xff]  }
  0x7d   : > { %1504 = vmatmul.mubr.bf16.gmra.mrb[36].mxu1 %v2818_v4  ;;  %1414 = vmatprep.mubr.bf16.mxu0 %v2876_v36  ;;  %v2453_v4 = vld [vmem:[%s3287_s2 + $0x230] sm:$0xff]  }
  0x7e   : > { %1511 = vmatprep.mubr.bf16.mxu1 %v2901_v48  ;;  %2283 = vmatpush3.bf16.msra.mxu1 %v2448_v61 }
  0x7f   : > { %2276 = vmatprep.subr.bf16.mxu1 %v2449_v52  ;;  %2246 = vmatpush3.bf16.msra.mxu0 %v2448_v61 }
  0x80   : > { %2247 = vmatprep.subr.bf16.mxu0 %v2449_v52 }
  0x82   : > { %2284 = vmatpush3.bf16.msra.mxu1 %v2449_v52 }
  0x83   : > { %2277 = vmatprep.subr.bf16.mxu1 %v2450_v62  ;;  %2248 = vmatpush3.bf16.msra.mxu0 %v2449_v52 }
  0x84   : > { %2249 = vmatprep.subr.bf16.mxu0 %v2450_v62  ;;  %1415 = vmatmul.mubr.bf16.gmra.mrb[40].mxu0 %v2863_v31  ;;  %v554_v31 = vshrl.u32 %v2992_v37, 16 }
  0x85   : > { %1512 = vmatmul.mubr.bf16.gmra.mrb[40].mxu1 %v2847_v21  ;;  %1422 = vmatprep.mubr.bf16.mxu0 %v2915_v56  ;;  %v2452_v21 = vld [vmem:[%s2960_s16 + $0x8] ss:$0 sps:$4 sm:$0x11]   ;;  %s275_s16 = sand.u32 1, %s2527_s19  }
  0x86   : > { %1519 = vmatprep.mubr.bf16.mxu1 %v2936_v7  ;;  %2285 = vmatpush3.bf16.msra.mxu1 %v2450_v62  ;;  %v561_v1 = vshll.u32 %v2452_v21, 16  ;;  %v567_v5 = vrot.slane %v2452_v21, 1  ;;  %s1862_s28 = sshll.u32 %s275_s16, 7  ;;  %s3233_s14 = scalar_lea.sflag [#allocation3], %s275_s16 }
  0x87   : > { %2278 = vmatprep.subr.bf16.mxu1 %v2451_v2  ;;  %2250 = vmatpush3.bf16.msra.mxu0 %v2450_v62  ;;  %s3177_s17 = scalar_lea.vmem [#allocation2], %s1862_s28 }
  0x88   : > { %2251 = vmatprep.subr.bf16.mxu0 %v2451_v2  ;;  %v563_v3 = vrot.slane %v561_v1, 1  ;;  %s1751_s30 = sshll.u32 %s3177_s17, 4  ;;  %s3226_s30 = int_to_ptr.vmem [resolvable:$true] %s1751_s30 }
  0x89   : > { %s2457_s15 = scalar_lea.vmem %s3226_s30, 2048  ;;  %p2464_p5 = scmp.lt.s32.totalorder %s3226_s30, %s2462_s12 }
  0x8a   : > { %2286 = vmatpush3.bf16.msra.mxu1 %v2451_v2  ;;  %p2458_p1 = scmp.ne.s32.totalorder %s3226_s30, %s2457_s15  ;;  %p2465_p6 = scmp.lt.s32.totalorder %s2463_s8, %s2457_s15 }
  0x8b   : > { %2279 = vmatprep.subr.bf16.mxu1 %v2453_v4  ;;  %2252 = vmatpush3.bf16.msra.mxu0 %v2451_v2 }
  0x8c   : > { %2253 = vmatprep.subr.bf16.mxu0 %v2453_v4  ;;  %1423 = vmatmul.mubr.bf16.gmra.mrb[44].mxu0 %v2901_v48  ;;  %p2459_p2 = pnand %p2458_p1, %p2637_p3  ;;  %p2466_p7 = por %p2465_p6, %p2464_p5 }
  0x8d   : > { %1520 = vmatmul.mubr.bf16.gmra.mrb[44].mxu1 %v2872_v35  ;;  %1430 = vmatprep.mubr.bf16.mxu0 %v2950_v13  ;;  %v559_v35 = vor.u32 %v558_v0, %v554_v31 }
  0x8e   : > { %1527 = vmatprep.mubr.bf16.mxu1 %v2975_v28  ;;  %2287 = vmatpush3.bf16.msra.mxu1 %v2453_v4  ;;  %p2460_p4 = pneg %p2459_p2 }
  0x8f   : > { %2280 = vmatprep.subr.bf16.mxu1 %v2456_v16  ;;  %2254 = vmatpush3.bf16.msra.mxu0 %v2453_v4  ;;  %v564_v48 = vsel %vm406_vm0, %v559_v35, %v563_v3 }
  0x90   : > { %2255 = vmatprep.subr.bf16.mxu0 %v2456_v16  ;;  %p2467_p9 = pnand %p2466_p7, %p2460_p4 }
  0x92   : > { %2288 = vmatpush3.bf16.msra.mxu1 %v2456_v16 }
  0x93   : > { %2256 = vmatpush3.bf16.msra.mxu0 %v2456_v16 }
  0x94   : > { %1431 = vmatmul.mubr.bf16.gmra.mrb[48].mxu0 %v2936_v7 }
  0x95   : > { %1528 = vmatmul.mubr.bf16.gmra.mrb[48].mxu1 %v2906_v53  ;;  %1438 = vmatprep.mubr.bf16.mxu0 %v2989_v34  ;;  %v566_v53 = vrot.slane %v2992_v37, 1 }
  0x96   : > { %1535 = vmatprep.mubr.bf16.mxu1 %v2998_v42 }
  0x97   : > { %v568_v7 = vsel %vm511_vm1, %v566_v53, %v567_v5 }
  0x9c   : > { %1439 = vmatmul.mubr.bf16.gmra.mrb[52].mxu0 %v2975_v28 }
  0x9d   : > { %1536 = vmatmul.mubr.bf16.gmra.mrb[52].mxu1 %v2933_v6  ;;  %1446 = vmatprep.mubr.bf16.mxu0 %v3003_v43 }
  0x9e   : > { %1543 = vmatprep.mubr.bf16.mxu1 %v564_v48 }
  0xa4   : > { %1447 = vmatmul.mubr.bf16.gmra.mrb[56].mxu0 %v2998_v42 }
  0xa5   : > { %1544 = vmatmul.mubr.bf16.gmra.mrb[56].mxu1 %v2992_v37  ;;  %1454 = vmatprep.mubr.bf16.mxu0 %v568_v7 }
  0xa6   : > { %1551 = vmatprep.mubr.bf16.mxu1 %v3020_v59 }
  0xac   : > { %1455 = vmatmul.mubr.bf16.gmra.mrb[60].mxu0 %v564_v48 }
  0xad   : > { %1552 = vmatmul.mubr.bf16.gmra.mrb[60].mxu1 %v3006_v44  ;;  %2257 = vmatprep.mubr.bf16.mxu0 %v2839_v17 }
  0xae   : > { %2265 = vmatprep.mubr.bf16.mxu1 %v2989_v34 }
  0xb4   : > { %2258 = vmatmul.mubr.bf16.vlgmr.msra.gmra.mrb[64].mxu0 %v2876_v36 }
  0xb5   : > { %2266 = vmatmul.mubr.bf16.vlgmr.msra.gmra.mrb[64].mxu1 %v3003_v43  ;;  %2261 = vmatprep.mubr.bf16.mxu0 %v2915_v56 }
  0xb6   : > { %2269 = vmatprep.mubr.bf16.mxu1 %v568_v7 }
  0xbc   : > { %2262 = vmatmul.mubr.bf16.gmra.mrb[68].mxu0 %v2950_v13 }
  0xbd   : > { %2270 = vmatmul.mubr.bf16.gmra.mrb[68].mxu1 %v3015_v57 }
 0x107   : > { %v1985_v12 = vpop.f32.mrb[0].mxu0 }
 0x108   : > { %v2049_v6 = vpop.f32.mrb[0].mxu1  ;;  %v1986_v15 = vpop.f32.mrb[1].mxu0 }
 0x109   : > { %v2050_v8 = vpop.f32.mrb[1].mxu1  ;;  %v1987_v17 = vadd.f32 %v1986_v15, %v1985_v12  ;;  %v1988_v18 = vpop.f32.mrb[2].mxu0 }
 0x10a   : > { %v2051_v9 = vadd.f32 %v2050_v8, %v2049_v6  ;;  %v2052_v10 = vpop.f32.mrb[2].mxu1  ;;  %v1989_v19 = vpop.f32.mrb[3].mxu0 }
 0x10b   : > { %v2053_v11 = vpop.f32.mrb[3].mxu1  ;;  %v1990_v36 = vadd.f32 %v1989_v19, %v1988_v18 }
 0x10c   : > { %v2054_v14 = vadd.f32 %v2053_v11, %v2052_v10  ;;  %v3083_v20 = vadd.f32 %v2051_v9, %v1987_v17 }
 0x10e   : > { %v3085_v23 = vadd.f32 %v2054_v14, %v1990_v36 }
 0x10f   : > { %v1991_v26 = vpop.f32.mrb[4].mxu0 }
 0x110   : > { %v2055_v22 = vpop.f32.mrb[4].mxu1  ;;  %v1992_v28 = vpop.f32.mrb[5].mxu0 }
 0x111   : > { %v2056_v56 = vpop.f32.mrb[5].mxu1  ;;  %v1993_v29 = vadd.f32 %v1992_v28, %v1991_v26  ;;  %v1994_v30 = vpop.f32.mrb[6].mxu0 }
 0x112   : > { %v2057_v24 = vadd.f32 %v2056_v56, %v2055_v22  ;;  %v2058_v13 = vpop.f32.mrb[6].mxu1  ;;  %v1995_v32 = vpop.f32.mrb[7].mxu0 }
 0x113   : > { %v2059_v25 = vpop.f32.mrb[7].mxu1  ;;  %v1996_v34 = vadd.f32 %v1995_v32, %v1994_v30 }
 0x114   : > { %v2060_v27 = vadd.f32 %v2059_v25, %v2058_v13  ;;  %v3087_v33 = vadd.f32 %v2057_v24, %v1993_v29 }
 0x116   : > { %v3089_v39 = vadd.f32 %v2060_v27, %v1996_v34 }
 0x117   : > { %v1997_v43 = vpop.f32.mrb[8].mxu0 }
 0x118   : > { %v2061_v37 = vpop.f32.mrb[8].mxu1  ;;  %v1998_v45 = vpop.f32.mrb[9].mxu0 }
 0x119   : > { %v2062_v38 = vpop.f32.mrb[9].mxu1  ;;  %v1999_v46 = vadd.f32 %v1998_v45, %v1997_v43  ;;  %v2000_v47 = vpop.f32.mrb[10].mxu0 }
 0x11a   : > { %v2063_v40 = vadd.f32 %v2062_v38, %v2061_v37  ;;  %v2064_v41 = vpop.f32.mrb[10].mxu1  ;;  %v2001_v49 = vpop.f32.mrb[11].mxu0 }
 0x11b   : > { %v2065_v42 = vpop.f32.mrb[11].mxu1  ;;  %v2002_v51 = vadd.f32 %v2001_v49, %v2000_v47 }
 0x11c   : > { %v2066_v44 = vadd.f32 %v2065_v42, %v2064_v41  ;;  %v3091_v50 = vadd.f32 %v2063_v40, %v1999_v46 }
 0x11e   : > { %v3093_v57 = vadd.f32 %v2066_v44, %v2002_v51 }
 0x11f   : > { %v2003_v61 = vpop.f32.mrb[12].mxu0 }
 0x120   : > { %v2067_v54 = vpop.f32.mrb[12].mxu1  ;;  %v2004_v62 = vpop.f32.mrb[13].mxu0 }
 0x121   : > { %v2068_v55 = vpop.f32.mrb[13].mxu1  ;;  %v2005_v2 = vadd.f32 %v2004_v62, %v2003_v61  ;;  %v2006_v4 = vpop.f32.mrb[14].mxu0 }
 0x122   : > { %v2069_v58 = vadd.f32 %v2068_v55, %v2067_v54  ;;  %v2070_v59 = vpop.f32.mrb[14].mxu1  ;;  %v2007_v16 = vpop.f32.mrb[15].mxu0 }
 0x123   : > { %v2071_v60 = vpop.f32.mrb[15].mxu1  ;;  %v2008_v63 = vadd.f32 %v2007_v16, %v2006_v4 }
 0x124   : > { %v2072_v52 = vadd.f32 %v2071_v60, %v2070_v59  ;;  %v3095_v21 = vadd.f32 %v2069_v58, %v2005_v2 }
 0x126   : > { %v3097_v1 = vadd.f32 %v2072_v52, %v2008_v63 }
 0x127   : > { %v2009_v53 = vpop.f32.mrb[16].mxu0 }
 0x128   : > { %v2073_v31 = vpop.f32.mrb[16].mxu1  ;;  %v2010_v7 = vpop.f32.mrb[17].mxu0 }
 0x129   : > { %v2074_v0 = vpop.f32.mrb[17].mxu1  ;;  %v2011_v6 = vadd.f32 %v2010_v7, %v2009_v53  ;;  %v2012_v8 = vpop.f32.mrb[18].mxu0 }
 0x12a   : > { %v2075_v35 = vadd.f32 %v2074_v0, %v2073_v31  ;;  %v2076_v3 = vpop.f32.mrb[18].mxu1  ;;  %v2013_v9 = vpop.f32.mrb[19].mxu0 }
 0x12b   : > { %v2077_v48 = vpop.f32.mrb[19].mxu1  ;;  %v2014_v11 = vadd.f32 %v2013_v9, %v2012_v8 }
 0x12c   : > { %v2078_v5 = vadd.f32 %v2077_v48, %v2076_v3  ;;  %v3099_v10 = vadd.f32 %v2075_v35, %v2011_v6 }
 0x12e   : > { %v3101_v15 = vadd.f32 %v2078_v5, %v2014_v11 }
 0x12f   : > { %v2015_v36 = vpop.f32.mrb[20].mxu0 }
 0x130   : > { %v2079_v12 = vpop.f32.mrb[20].mxu1  ;;  %v2016_v56 = vpop.f32.mrb[21].mxu0 }
 0x131   : > { %v2080_v14 = vpop.f32.mrb[21].mxu1  ;;  %v2017_v24 = vadd.f32 %v2016_v56, %v2015_v36  ;;  %v2018_v13 = vpop.f32.mrb[22].mxu0 }
 0x132   : > { %v2081_v17 = vadd.f32 %v2080_v14, %v2079_v12  ;;  %v2082_v18 = vpop.f32.mrb[22].mxu1  ;;  %v2019_v25 = vpop.f32.mrb[23].mxu0 }
 0x133   : > { %v2083_v19 = vpop.f32.mrb[23].mxu1  ;;  %v2020_v27 = vadd.f32 %v2019_v25, %v2018_v13 }
 0x134   : > { %v2084_v22 = vadd.f32 %v2083_v19, %v2082_v18  ;;  %v3103_v26 = vadd.f32 %v2081_v17, %v2017_v24 }
 0x136   : > { %v3105_v30 = vadd.f32 %v2084_v22, %v2020_v27 }
 0x137   : > { %v2021_v38 = vpop.f32.mrb[24].mxu0 }
 0x138   : > { %v2085_v28 = vpop.f32.mrb[24].mxu1  ;;  %v2022_v41 = vpop.f32.mrb[25].mxu0 }
 0x139   : > { %v2086_v29 = vpop.f32.mrb[25].mxu1  ;;  %v2023_v42 = vadd.f32 %v2022_v41, %v2021_v38  ;;  %v2024_v43 = vpop.f32.mrb[26].mxu0 }
 0x13a   : > { %v2087_v32 = vadd.f32 %v2086_v29, %v2085_v28  ;;  %v2088_v34 = vpop.f32.mrb[26].mxu1  ;;  %v2025_v44 = vpop.f32.mrb[27].mxu0 }
 0x13b   : > { %v2089_v37 = vpop.f32.mrb[27].mxu1  ;;  %v2026_v46 = vadd.f32 %v2025_v44, %v2024_v43 }
 0x13c   : > { %v2090_v40 = vadd.f32 %v2089_v37, %v2088_v34  ;;  %v3107_v45 = vadd.f32 %v2087_v32, %v2023_v42 }
 0x13e   : > { %v3109_v51 = vadd.f32 %v2090_v40, %v2026_v46 }
 0x13f   : > { %v2027_v59 = vpop.f32.mrb[28].mxu0 }
 0x140   : > { %v2091_v47 = vpop.f32.mrb[28].mxu1  ;;  %v2028_v61 = vpop.f32.mrb[29].mxu0 }
 0x141   : > { %v2092_v49 = vpop.f32.mrb[29].mxu1  ;;  %v2029_v52 = vadd.f32 %v2028_v61, %v2027_v59  ;;  %v2030_v62 = vpop.f32.mrb[30].mxu0 }
 0x142   : > { %v2093_v54 = vadd.f32 %v2092_v49, %v2091_v47  ;;  %v2094_v55 = vpop.f32.mrb[30].mxu1  ;;  %v2031_v2 = vpop.f32.mrb[31].mxu0 }
 0x143   : > { %v2095_v58 = vpop.f32.mrb[31].mxu1  ;;  %v2032_v16 = vadd.f32 %v2031_v2, %v2030_v62 }
 0x144   : > { %v2096_v60 = vadd.f32 %v2095_v58, %v2094_v55  ;;  %v3111_v4 = vadd.f32 %v2093_v54, %v2029_v52 }
 0x146   : > { %v3113_v0 = vadd.f32 %v2096_v60, %v2032_v16 }
 0x147   : > { %v2113_v53 = vpop.f32.mrb[32].mxu0 }
 0x148   : > { %v2177_v63 = vpop.f32.mrb[32].mxu1  ;;  %v2114_v7 = vpop.f32.mrb[33].mxu0 }
 0x149   : > { %v2178_v31 = vpop.f32.mrb[33].mxu1  ;;  %v2115_v6 = vadd.f32 %v2114_v7, %v2113_v53  ;;  %v2116_v8 = vpop.f32.mrb[34].mxu0 }
 0x14a   : > { %v2179_v35 = vadd.f32 %v2178_v31, %v2177_v63  ;;  %v2180_v3 = vpop.f32.mrb[34].mxu1  ;;  %v2117_v9 = vpop.f32.mrb[35].mxu0 }
 0x14b   : > { %v2181_v48 = vpop.f32.mrb[35].mxu1  ;;  %v1401_v11 = vadd.f32 %v2115_v6, %v3083_v20  ;;  %v2118_v12 = vadd.f32 %v2117_v9, %v2116_v8 }
 0x14c   : > { %v2182_v5 = vadd.f32 %v2181_v48, %v2180_v3 }
 0x14d   : > { %v1404_v18 = vadd.f32 %v2118_v12, %v3085_v23  ;;  %v3117_v22 = vadd.f32 %v2179_v35, %v1401_v11 }
 0x14f   : > { %v2119_v24 = vpop.f32.mrb[36].mxu0  ;;  %v3119_v25 = vadd.f32 %v2182_v5, %v1404_v18 }
 0x150   : > { %v2183_v14 = vpop.f32.mrb[36].mxu1  ;;  %v2120_v27 = vpop.f32.mrb[37].mxu0 }
 0x151   : > { %v2184_v17 = vpop.f32.mrb[37].mxu1  ;;  %v2121_v28 = vadd.f32 %v2120_v27, %v2119_v24  ;;  %v2122_v29 = vpop.f32.mrb[38].mxu0 }
 0x152   : > { %v2185_v19 = vadd.f32 %v2184_v17, %v2183_v14  ;;  %v2186_v36 = vpop.f32.mrb[38].mxu1  ;;  %v2123_v32 = vpop.f32.mrb[39].mxu0 }
 0x153   : > { %v2187_v56 = vpop.f32.mrb[39].mxu1  ;;  %v1409_v20 = vadd.f32 %v2121_v28, %v3087_v33  ;;  %v2124_v34 = vadd.f32 %v2123_v32, %v2122_v29 }
 0x154   : > { %v2188_v13 = vadd.f32 %v2187_v56, %v2186_v36 }
 0x155   : > { %v1412_v23 = vadd.f32 %v2124_v34, %v3089_v39  ;;  %v3123_v42 = vadd.f32 %v2185_v19, %v1409_v20 }
 0x157   : > { %v2125_v44 = vpop.f32.mrb[40].mxu0  ;;  %v3125_v47 = vadd.f32 %v2188_v13, %v1412_v23 }
 0x158   : > { %v2189_v37 = vpop.f32.mrb[40].mxu1  ;;  %v2126_v49 = vpop.f32.mrb[41].mxu0 }
 0x159   : > { %v2190_v38 = vpop.f32.mrb[41].mxu1  ;;  %v2127_v54 = vadd.f32 %v2126_v49, %v2125_v44  ;;  %v2128_v55 = vpop.f32.mrb[42].mxu0 }
 0x15a   : > { %v2191_v40 = vadd.f32 %v2190_v38, %v2189_v37  ;;  %v2192_v41 = vpop.f32.mrb[42].mxu1  ;;  %v2129_v58 = vpop.f32.mrb[43].mxu0 }
 0x15b   : > { %v2193_v43 = vpop.f32.mrb[43].mxu1  ;;  %v1417_v33 = vadd.f32 %v2127_v54, %v3091_v50  ;;  %v2130_v59 = vadd.f32 %v2129_v58, %v2128_v55 }
 0x15c   : > { %v2194_v46 = vadd.f32 %v2193_v43, %v2192_v41 }
 0x15d   : > { %v1420_v39 = vadd.f32 %v2130_v59, %v3093_v57  ;;  %v3129_v2 = vadd.f32 %v2191_v40, %v1417_v33 }
 0x15f   : > { %v2131_v63 = vpop.f32.mrb[44].mxu0  ;;  %v3131_v35 = vadd.f32 %v2194_v46, %v1420_v39 }
 0x160   : > { %v2195_v60 = vpop.f32.mrb[44].mxu1  ;;  %v2132_v3 = vpop.f32.mrb[45].mxu0 }
 0x161   : > { %v2196_v61 = vpop.f32.mrb[45].mxu1  ;;  %v2133_v48 = vadd.f32 %v2132_v3, %v2131_v63  ;;  %v2134_v53 = vpop.f32.mrb[46].mxu0 }
 0x162   : > { %v2197_v52 = vadd.f32 %v2196_v61, %v2195_v60  ;;  %v2198_v62 = vpop.f32.mrb[46].mxu1  ;;  %v2135_v5 = vpop.f32.mrb[47].mxu0 }
 0x163   : > { %v2199_v16 = vpop.f32.mrb[47].mxu1  ;;  %v1425_v50 = vadd.f32 %v2133_v48, %v3095_v21  ;;  %v2136_v7 = vadd.f32 %v2135_v5, %v2134_v53 }
 0x164   : > { %v2200_v31 = vadd.f32 %v2199_v16, %v2198_v62 }
 0x165   : > { %v1428_v57 = vadd.f32 %v2136_v7, %v3097_v1  ;;  %v3135_v12 = vadd.f32 %v2197_v52, %v1425_v50 }
 0x167   : > { %v2137_v17 = vpop.f32.mrb[48].mxu0  ;;  %v3137_v19 = vadd.f32 %v2200_v31, %v1428_v57 }
 0x168   : > { %v2201_v6 = vpop.f32.mrb[48].mxu1  ;;  %v2138_v36 = vpop.f32.mrb[49].mxu0 }
 0x169   : > { %v2202_v8 = vpop.f32.mrb[49].mxu1  ;;  %v2139_v56 = vadd.f32 %v2138_v36, %v2137_v17  ;;  %v2140_v24 = vpop.f32.mrb[50].mxu0 }
 0x16a   : > { %v2203_v9 = vadd.f32 %v2202_v8, %v2201_v6  ;;  %v2204_v11 = vpop.f32.mrb[50].mxu1  ;;  %v2141_v13 = vpop.f32.mrb[51].mxu0 }
 0x16b   : > { %v2205_v14 = vpop.f32.mrb[51].mxu1  ;;  %v1433_v21 = vadd.f32 %v2139_v56, %v3099_v10  ;;  %v2142_v27 = vadd.f32 %v2141_v13, %v2140_v24 }
 0x16c   : > { %v2206_v18 = vadd.f32 %v2205_v14, %v2204_v11 }
 0x16d   : > { %v1436_v1 = vadd.f32 %v2142_v27, %v3101_v15  ;;  %v1530_v34 = vadd.f32 %v2203_v9, %v1433_v21  ;;  %v3158_v27 = vld [vmem:[%s3289_s4] ss:$0 sm:$0xff] }
 0x16f   : > { %v2143_v38 = vpop.f32.mrb[52].mxu0  ;;  %v1533_v40 = vadd.f32 %v2206_v18, %v1436_v1 }
 0x170   : > { %v2207_v28 = vpop.f32.mrb[52].mxu1  ;;  %v2144_v41 = vpop.f32.mrb[53].mxu0 }
 0x171   : > { %v2208_v29 = vpop.f32.mrb[53].mxu1  ;;  %v2145_v43 = vadd.f32 %v2144_v41, %v2143_v38  ;;  %v2146_v44 = vpop.f32.mrb[54].mxu0 }
 0x172   : > { %v2209_v32 = vadd.f32 %v2208_v29, %v2207_v28  ;;  %v2210_v20 = vpop.f32.mrb[54].mxu1  ;;  %v2147_v46 = vpop.f32.mrb[55].mxu0 }
 0x173   : > { %v2211_v37 = vpop.f32.mrb[55].mxu1  ;;  %v1441_v49 = vadd.f32 %v2145_v43, %v3103_v26  ;;  %v2148_v54 = vadd.f32 %v2147_v46, %v2146_v44 }
 0x174   : > { %v2212_v23 = vadd.f32 %v2211_v37, %v2210_v20 }
 0x175   : > { %v1444_v58 = vadd.f32 %v2148_v54, %v3105_v30  ;;  %v1538_v59 = vadd.f32 %v2209_v32, %v1441_v49 }
 0x177   : > { %v2149_v61 = vpop.f32.mrb[56].mxu0  ;;  %v1541_v52 = vadd.f32 %v2212_v23, %v1444_v58 }
 0x178   : > { %v2213_v10 = vpop.f32.mrb[56].mxu1  ;;  %v2150_v62 = vpop.f32.mrb[57].mxu0 }
 0x179   : > { %v2214_v55 = vpop.f32.mrb[57].mxu1  ;;  %v2151_v16 = vadd.f32 %v2150_v62, %v2149_v61  ;;  %v2152_v63 = vpop.f32.mrb[58].mxu0 }
 0x17a   : > { %v2215_v33 = vadd.f32 %v2214_v55, %v2213_v10  ;;  %v2216_v15 = vpop.f32.mrb[58].mxu1  ;;  %v2153_v31 = vpop.f32.mrb[59].mxu0 }
 0x17b   : > { %v2217_v60 = vpop.f32.mrb[59].mxu1  ;;  %v1449_v3 = vadd.f32 %v2151_v16, %v3107_v45  ;;  %v2154_v48 = vadd.f32 %v2153_v31, %v2152_v63 }
 0x17c   : > { %v2218_v39 = vadd.f32 %v2217_v60, %v2216_v15 }
 0x17d   : > { %v1452_v5 = vadd.f32 %v2154_v48, %v3109_v51  ;;  %v1546_v7 = vadd.f32 %v2215_v33, %v1449_v3  ;;  %v3152_v51 = vld [vmem:[%s3288_s3] ss:$0 sm:$0xff] }
 0x17f   : > { %v2155_v8 = vpop.f32.mrb[60].mxu0  ;;  %v3145_v9 = vadd.f32 %v2218_v39, %v1452_v5 }
 0x180   : > { %v2219_v26 = vpop.f32.mrb[60].mxu1  ;;  %v2156_v11 = vpop.f32.mrb[61].mxu0 }
 0x181   : > { %v2220_v53 = vpop.f32.mrb[61].mxu1  ;;  %v2157_v14 = vadd.f32 %v2156_v11, %v2155_v8  ;;  %v2158_v17 = vpop.f32.mrb[62].mxu0 }
 0x182   : > { %v2221_v30 = vadd.f32 %v2220_v53, %v2219_v26  ;;  %v2222_v50 = vpop.f32.mrb[62].mxu1  ;;  %v2159_v18 = vpop.f32.mrb[63].mxu0 }
 0x183   : > { %v2223_v6 = vpop.f32.mrb[63].mxu1  ;;  %v1457_v45 = vadd.f32 %v2157_v14, %v3111_v4  ;;  %v2160_v36 = vadd.f32 %v2159_v18, %v2158_v17 }
 0x184   : > { %v2224_v57 = vadd.f32 %v2223_v6, %v2222_v50 }
 0x185   : > { %v1460_v21 = vadd.f32 %v2160_v36, %v3113_v0  ;;  %v1554_v4 = vadd.f32 %v2221_v30, %v1457_v45 }
 0x187   : > { %v2259_v37 = vpop.f32.mrb[64].mxu0  ;;  %v1557_v41 = vadd.f32 %v2224_v57, %v1460_v21 }
 0x188   : > { %v2267_v56 = vpop.f32.mrb[64].mxu1  ;;  %v1603_v0 = vadd.f32 %v2259_v37, %v3123_v42  ;;  %v1594_v44 = vpop.f32.mrb[65].mxu0 }
 0x189   : > { %v1635_v24 = vadd.f32 %v2267_v56, %v1538_v59  ;;  %v1626_v13 = vpop.f32.mrb[65].mxu1  ;;  %v1595_v46 = vadd.f32 %v1594_v44, %v3117_v22  ;;  %v2260_v54 = vpop.f32.mrb[66].mxu0 }
 0x18a   : > { %v1627_v28 = vadd.f32 %v1626_v13, %v1530_v34  ;;  %v2268_v29 = vpop.f32.mrb[66].mxu1  ;;  %v1666_v55 = vmul.f32 %v3152_v51, %v1603_v0  ;;  %v1597_v42 = vpop.f32.mrb[67].mxu0 }
 0x18b   : > { %v1674_v1 = vmul.f32 %v3152_v51, %v1635_v24  ;;  %v1638_v32 = vadd.f32 %v2268_v29, %v1541_v52  ;;  %v1629_v20 = vpop.f32.mrb[67].mxu1  ;;  %v1664_v15 = vmul.f32 %v3152_v51, %v1595_v46  ;;  %v1598_v60 = vadd.f32 %v1597_v42, %v3119_v25 }
 0x18c   : > { %v1672_v38 = vmul.f32 %v3152_v51, %v1627_v28  ;;  %v1630_v23 = vadd.f32 %v1629_v20, %v1533_v40  ;;  %v1606_v40 = vadd.f32 %v2260_v54, %v3125_v47  ;;  %v1689_v39 = vadd.f32 %v3158_v27, %v1666_v55 }
 0x18d   : > { %v1697_v43 = vadd.f32 %v3158_v27, %v1674_v1  ;;  %v1675_v34 = vmul.f32 %v3152_v51, %v1638_v32  ;;  %v1687_v63 = vadd.f32 %v3158_v27, %v1664_v15  ;;  %v1665_v25 = vmul.f32 %v3152_v51, %v1598_v60 }
 0x18e   : > { %v1695_v49 = vadd.f32 %v3158_v27, %v1672_v38  ;;  %v1673_v10 = vmul.f32 %v3152_v51, %v1630_v23  ;;  %v1667_v47 = vmul.f32 %v3152_v51, %v1606_v40  ;;  %v1705_v26 = vmax.f32 %v1689_v39, 0.0 }
 0x18f   : > { %v1713_v58 = vmax.f32 %v1697_v43, 0.0  ;;  %v1698_v33 = vadd.f32 %v3158_v27, %v1675_v34  ;;  %v1703_v6 = vmax.f32 %v1687_v63, 0.0  ;;  %v1688_v8 = vadd.f32 %v3158_v27, %v1665_v25  ;;  %v2263_v57 = vpop.f32.mrb[68].mxu0 }
 0x190   : > { %v1711_v59 = vmax.f32 %v1695_v49, 0.0  ;;  %v1696_v22 = vadd.f32 %v3158_v27, %v1673_v10  ;;  %v2271_v61 = vpop.f32.mrb[68].mxu1  ;;  %v1690_v53 = vadd.f32 %v3158_v27, %v1667_v47  ;;  %1721 = vst [vmem:[%s3177_s17 + $0x10] sm:$0xff] %v1705_v26  ;;  %v1619_v17 = vadd.f32 %v2263_v57, %v3135_v12  ;;  %v1610_v45 = vpop.f32.mrb[69].mxu0 }
 0x191   : > { %1729 = vst [vmem:[%s3177_s17 + $0x50] sm:$0xff] %v1713_v58  ;;  %v1714_v52 = vmax.f32 %v1698_v33, 0.0  ;;  %v1651_v62 = vadd.f32 %v2271_v61, %v1554_v4  ;;  %v1642_v16 = vpop.f32.mrb[69].mxu1  ;;  %1719 = vst [vmem:[%s3177_s17] sm:$0xff] %v1703_v6  ;;  %v1704_v56 = vmax.f32 %v1688_v8, 0.0  ;;  %v1611_v24 = vadd.f32 %v1610_v45, %v3129_v2 }
 0x192   : > { %1727 = vst [vmem:[%s3177_s17 + $0x40] sm:$0xff] %v1711_v59  ;;  %v1712_v31 = vmax.f32 %v1696_v22, 0.0  ;;  %v1643_v3 = vadd.f32 %v1642_v16, %v1546_v7  ;;  %v2272_v48 = vpop.f32.mrb[70].mxu1  ;;  %v1706_v14 = vmax.f32 %v1690_v53, 0.0  ;;  %v1670_v28 = vmul.f32 %v3152_v51, %v1619_v17 }
 0x193   : > { %1730 = vst [vmem:[%s3177_s17 + $0x58] sm:$0xff] %v1714_v52  ;;  %v1678_v5 = vmul.f32 %v3152_v51, %v1651_v62  ;;  %v1654_v30 = vadd.f32 %v2272_v48, %v1557_v41  ;;  %v1645_v50 = vpop.f32.mrb[71].mxu1  ;;  %1720 = vst [vmem:[%s3177_s17 + $0x8] sm:$0xff] %v1704_v56  ;;  %v1668_v2 = vmul.f32 %v3152_v51, %v1611_v24 }
 0x194   : > { %1728 = vst [vmem:[%s3177_s17 + $0x48] sm:$0xff] %v1712_v31  ;;  %v1676_v11 = vmul.f32 %v3152_v51, %v1643_v3  ;;  %v1646_v7 = vadd.f32 %v1645_v50, %v3145_v9  ;;  %v2264_v9 = vpop.f32.mrb[70].mxu0  ;;  %1722 = vst [vmem:[%s3177_s17 + $0x18] sm:$0xff] %v1706_v14  ;;  %v1693_v38 = vadd.f32 %v3158_v27, %v1670_v28 }
 0x195   : > { %v1701_v18 = vadd.f32 %v3158_v27, %v1678_v5  ;;  %v1679_v36 = vmul.f32 %v3152_v51, %v1654_v30  ;;  %v1622_v29 = vadd.f32 %v2264_v9, %v3137_v19  ;;  %v1613_v1 = vpop.f32.mrb[71].mxu0  ;;  %v1691_v41 = vadd.f32 %v3158_v27, %v1668_v2 }
 0x196   : > { %v1699_v13 = vadd.f32 %v3158_v27, %v1676_v11  ;;  %v1677_v21 = vmul.f32 %v3152_v51, %v1646_v7  ;;  %v1614_v20 = vadd.f32 %v1613_v1, %v3131_v35  ;;  %v1709_v35 = vmax.f32 %v1693_v38, 0.0 }
 0x197   : > { %v1717_v12 = vmax.f32 %v1701_v18, 0.0  ;;  %v1702_v4 = vadd.f32 %v3158_v27, %v1679_v36  ;;  %v1671_v19 = vmul.f32 %v3152_v51, %v1622_v29  ;;  %v1707_v34 = vmax.f32 %v1691_v41, 0.0 }
 0x198   : > { %v1715_v32 = vmax.f32 %v1699_v13, 0.0  ;;  %v1700_v37 = vadd.f32 %v3158_v27, %v1677_v21  ;;  %v1669_v0 = vmul.f32 %v3152_v51, %v1614_v20  ;;  %1725 = vst [vmem:[%s3177_s17 + $0x30] sm:$0xff] %v1709_v35 }
 0x199   : > { %1733 = vst [vmem:[%s3177_s17 + $0x70] sm:$0xff] %v1717_v12  ;;  %v1718_v23 = vmax.f32 %v1702_v4, 0.0  ;;  %v1694_v44 = vadd.f32 %v3158_v27, %v1671_v19  ;;  %1723 = vst [vmem:[%s3177_s17 + $0x20] sm:$0xff] %v1707_v34 }
 0x19a   : > { %1731 = vst [vmem:[%s3177_s17 + $0x60] sm:$0xff] %v1715_v32  ;;  %v1716_v43 = vmax.f32 %v1700_v37, 0.0  ;;  %v1692_v46 = vadd.f32 %v3158_v27, %v1669_v0 }
 0x19b   : > { %1734 = vst [vmem:[%s3177_s17 + $0x78] sm:$0xff] %v1718_v23  ;;  %v1710_v49 = vmax.f32 %v1694_v44, 0.0 }
 0x19c   : > { %1732 = vst [vmem:[%s3177_s17 + $0x68] sm:$0xff] %v1716_v43  ;;  %v1708_v51 = vmax.f32 %v1692_v46, 0.0 }
 0x19d   : > { %1726 = vst [vmem:[%s3177_s17 + $0x38] sm:$0xff] %v1710_v49 }
 0x19e   : > { %1724 = vst [vmem:[%s3177_s17 + $0x28] sm:$0xff] %v1708_v51 }
 0x19f   : > { %2470 = shalt.err (!%p2467_p9)
}
 0x1a0   : > { %s2471_s16 = scalar_lea.hbm %s3224_s29, 2048  ;;  %s2475_s27 = scalar_lea.hbm %s3290_s5, 8192 }
 0x1a1   : > { %p2472_p10 = scmp.ne.s32.totalorder %s3224_s29, %s2471_s16  ;;  %p2476_p13 = scmp.lt.u32.totalorder %s3224_s29, %s3290_s5 }
 0x1a2   : > { %p2477_p0 = scmp.lt.u32.totalorder %s2475_s27, %s2471_s16  ;;  %p2479_p2 = scmp.lt.u32.totalorder %s2471_s16, %s3224_s29 }
 0x1a3   : > { %p2473_p11 = pnand %p2472_p10, %p2637_p3 }
 0x1a4   : > { %p2478_p1 = por %p2477_p0, %p2476_p13 }
 0x1a5   : > { %p2474_p12 = pneg %p2473_p11 }
 0x1a6   : > { %p2480_p4 = por %p2479_p2, %p2478_p1 }
 0x1a8   : > { %p2481_p5 = pnand %p2480_p4, %p2474_p12 }
 0x1aa   : > { %2484 = shalt.err (!%p2481_p5)
}
 0x1ab   : > { %s2554_s22 = smov 128   ;;  %s2555_s13 = smov 8  }
 0x1ac   : > { %2292 = dma.vmem_to_hbm [thread:$0]  (%p2637_p3), %s3226_s30, 2048, %s3224_s29, %s3233_s14, %s2554_s22, %s2554_s22, %s2555_s13  }
 0x1ad PF: > { %p2298_p6 = scmp.ge.s32.totalorder %s2551_s25, 2  ;;  %s1766_s26 = sand.u32 1, %s2523_s18  }
 0x1ae   : > { %s1767_s15 = scalar_lea.sflag [#allocation3], %s1766_s26 }
 0x1af   : > { %p2295_p7 = pnand %p2298_p6, %p2646_p8 }
 0x1b1   : > { %2518 = dma.done.wait (!%p2295_p7), %s1767_s15, 2048  }
 0x1b2   : > { %2520 = vsyncadd (!%p2295_p7), %s1767_s15, 4294965248  ;;  %s18_s25 = sadd.s32 1, %s2551_s25   ;;  %s3299_s6 = sld [smem:[#allocation5_spill]] }
 0x1b3   : > { %p15_p9 = scmp.ge.s32.totalorder %s18_s25, 6   ;;  %s3300_s30 = sld [smem:[#allocation6_spill]] }
 0x1b4   : > { %s3301_s18 = smov %s2527_s19  ;;  %s3302_s19 = smov %s2531_s20 }
 0x1b5   : > { %s3303_s20 = smov %s2655_s11  ;;  %s3304_s21 = smov %s2543_s23 }
 0x1b6   : > { %s3305_s22 = smov %s2547_s24  ;;  %17 = sbr.rel (!%p15_p9) target bundleno = 5 (0x5), region = 78 }
 0x1b8   : > { %s3306_s23 = smov %s3299_s6 }
 0x1b9   : > { %s3307_s24 = smov %s3300_s30 }
 0x1bd   :  { %1772 = vsyncpa [#allocation3], 1 }
 0x1be   :  { %1774 = vsyncpa [#allocation3 + $0x1], 1 }

</bundles_post_ra>
